<compile_context>
chip_gen: v5e
topology: v5e:2x2
jax: 0.10.0
libtpu: 0.0.40
codegen_flags: <defaults>
</compile_context>

<pallas_src>
import jax
import jax.numpy as jnp
from jax.experimental import pallas as pl
from jax.experimental.pallas import tpu as pltpu


def _round_up(x: int, m: int) -> int:
    return ((x + m - 1) // m) * m


def _pad2(a, rows: int, cols: int):
    pr, pc = rows - a.shape[0], cols - a.shape[1]
    if pr == 0 and pc == 0:
        return a
    return jnp.pad(a, ((0, pr), (0, pc)))


# ---------------------------------------------------------------------------
# Resident-weight path: grid over rows only; W1/W2 live in VMEM for the whole call.
# ---------------------------------------------------------------------------
def ffn_resident_kernel(x_ref, w1_ref, b1_ref, w2_ref, b2_ref, o_ref):
    h = jnp.dot(x_ref[...], w1_ref[...], preferred_element_type=jnp.float32)
    h = jnp.maximum(h + b1_ref[...], 0.0)
    # TODO(synk): dropout is identity in eval mode; training-mode dropout would build a
    # keep-mask in-kernel with pltpu.prng_seed / pltpu.prng_random_bits.
    o = jnp.dot(h.astype(w2_ref.dtype), w2_ref[...], preferred_element_type=jnp.float32)
    o_ref[...] = (o + b2_ref[...]).astype(o_ref.dtype)


# ---------------------------------------------------------------------------
# Streaming path: grid = (rows, F-tiles); F is the trailing reduction axis.
# ---------------------------------------------------------------------------
def ffn_streaming_kernel(x_ref, w1_ref, b1_ref, w2_ref, b2_ref, o_ref, acc_ref):
    f = pl.program_id(1)

    @pl.when(f == 0)
    def _init():
        acc_ref[...] = jnp.zeros_like(acc_ref)

    # fc1 partial over this F-tile: (tm, H) @ (H, tF) -> f32, bias + ReLU per tile.
    h = jnp.dot(x_ref[...], w1_ref[...], preferred_element_type=jnp.float32)
    h = jnp.maximum(h + b1_ref[...], 0.0)

    # fc2 partial: accumulate (tm, tF) @ (tF, H) into the f32 scratch accumulator.
    acc_ref[...] += jnp.dot(h.astype(w2_ref.dtype), w2_ref[...],
                            preferred_element_type=jnp.float32)

    @pl.when(f == pl.num_programs(1) - 1)
    def _finalize():
        o_ref[...] = (acc_ref[...] + b2_ref[...]).astype(o_ref.dtype)


def ffn_pallas(x, w1, b1, w2, b2, *, tm=None, tf=None,
               compute_dtype=jnp.bfloat16,
               max_resident_weight_bytes=20 * 2**20):
    """Fused fc1 -> ReLU -> (eval dropout) -> fc2.

    x: (..., H); w1: (H, F); b1: (F,); w2: (F, H); b2: (H,).
    Weights are stored (in, out), i.e. transposed vs PyTorch nn.Linear.weight.
    Set max_resident_weight_bytes=0 to force the weight-streaming path.
    """
    orig_shape = x.shape
    out_dtype = x.dtype
    H = w1.shape[0]
    F = w1.shape[1]
    assert orig_shape[-1] == H and w2.shape == (F, H)
    assert b1.shape == (F,) and b2.shape == (H,)

    x2 = x.reshape(-1, H)
    M = x2.shape[0]

    # Lane-dense padding for the hidden / inner dims (multiples of 128).
    Hp = _round_up(H, 128)
    Fp = _round_up(F, 128)

    # Row tile: big enough to amortize per-step overhead and weight streaming;
    # multiple of the bf16 sublane pack (16).
    if tm is None:
        if M >= 512:
            tm = 512
        elif M >= 256:
            tm = 256
        else:
            tm = _round_up(max(M, 16), 16)
    tm = _round_up(tm, 16)
    Mp = _round_up(M, tm)

    cbytes = jnp.dtype(compute_dtype).itemsize
    obytes = jnp.dtype(out_dtype).itemsize

    # ----- choose the resident-weight fast path when the weights fit in VMEM -----
    w_bytes = 2 * Hp * Fp * cbytes  # W1 + W2 (single copy, compute dtype)
    resident_est = (
        2 * tm * Hp * cbytes          # x tile (double-buffered)
        + 2 * w_bytes                 # weights (conservatively double-buffered)
        + 2 * (Fp + Hp) * 4           # biases (f32)
        + 2 * tm * Hp * obytes        # out tile
        + tm * Fp * (4 + cbytes)      # fc1 intermediate (f32 + bf16 temp)
    )
    use_resident = (tf is None
                    and w_bytes <= max_resident_weight_bytes
                    and resident_est <= 44 * 2**20)

    # Pad + cast operands (zeros in padded F-columns of W1/b1 give relu(0)=0, which
    # contributes nothing through W2; padded rows/cols are sliced off at the end).
    xp = _pad2(x2.astype(compute_dtype), Mp, Hp)
    b2p = _pad2(b2.astype(jnp.float32).reshape(1, H), 1, Hp)

    if use_resident:
        w1p = _pad2(w1.astype(compute_dtype), Hp, Fp)
        w2p = _pad2(w2.astype(compute_dtype), Fp, Hp)
        b1p = _pad2(b1.astype(jnp.float32).reshape(1, F), 1, Fp)

        vmem_limit = int(min(48 * 2**20, max(2 * resident_est, 8 * 2**20)))
        out = pl.pallas_call(
            ffn_resident_kernel,
            out_shape=jax.ShapeDtypeStruct((Mp, Hp), out_dtype),
            grid_spec=pltpu.PrefetchScalarGridSpec(
                num_scalar_prefetch=0,
                grid=(Mp // tm,),
                in_specs=[
                    pl.BlockSpec((tm, Hp), lambda i: (i, 0)),   # x rows (streamed)
                    pl.BlockSpec((Hp, Fp), lambda i: (0, 0)),   # W1 (resident)
                    pl.BlockSpec((1, Fp), lambda i: (0, 0)),    # b1
                    pl.BlockSpec((Fp, Hp), lambda i: (0, 0)),   # W2 (resident)
                    pl.BlockSpec((1, Hp), lambda i: (0, 0)),    # b2
                ],
                out_specs=pl.BlockSpec((tm, Hp), lambda i: (i, 0)),
            ),
            compiler_params=pltpu.CompilerParams(
                dimension_semantics=("parallel",),
                vmem_limit_bytes=vmem_limit,
            ),
        )(xp, w1p, b1p, w2p, b2p)
        return out[:M, :H].reshape(orig_shape)

    # ----- streaming path: tile the FFN inner dim F -----
    if tf is None:
        tf = 512 if Fp >= 512 else Fp
    tf = min(_round_up(tf, 128), Fp)
    Fp = _round_up(Fp, tf)

    w1p = _pad2(w1.astype(compute_dtype), Hp, Fp)
    w2p = _pad2(w2.astype(compute_dtype), Fp, Hp)
    b1p = _pad2(b1.astype(jnp.float32).reshape(1, F), 1, Fp)

    grid = (Mp // tm, Fp // tf)

    # Per-step VMEM: double-buffered input/weight/bias/output tiles + f32 accumulator.
    vmem_est = (
        2 * tm * Hp * cbytes        # x tile
        + 2 * Hp * tf * cbytes      # W1 tile
        + 2 * tf * Hp * cbytes      # W2 tile
        + 2 * tf * 4 + 2 * Hp * 4   # biases (f32)
        + 2 * tm * Hp * obytes      # out tile
        + tm * Hp * 4               # accumulator scratch
        + tm * tf * (4 + cbytes)    # fc1 intermediate temps
    )
    vmem_limit = int(min(48 * 2**20, max(2 * vmem_est, 8 * 2**20)))

    out = pl.pallas_call(
        ffn_streaming_kernel,
        out_shape=jax.ShapeDtypeStruct((Mp, Hp), out_dtype),
        grid_spec=pltpu.PrefetchScalarGridSpec(
            num_scalar_prefetch=0,
            grid=grid,
            in_specs=[
                pl.BlockSpec((tm, Hp), lambda i, f: (i, 0)),   # x rows (reused across f)
                pl.BlockSpec((Hp, tf), lambda i, f: (0, f)),   # W1 F-tile (streamed)
                pl.BlockSpec((1, tf), lambda i, f: (0, f)),    # b1 F-tile
                pl.BlockSpec((tf, Hp), lambda i, f: (f, 0)),   # W2 F-tile (streamed)
                pl.BlockSpec((1, Hp), lambda i, f: (0, 0)),    # b2 (finalize only)
            ],
            out_specs=pl.BlockSpec((tm, Hp), lambda i, f: (i, 0)),
            scratch_shapes=[pltpu.VMEM((tm, Hp), jnp.float32)],
        ),
        compiler_params=pltpu.CompilerParams(
            dimension_semantics=("parallel", "arbitrary"),
            vmem_limit_bytes=vmem_limit,
        ),
    )(xp, w1p, b1p, w2p, b2p)

    return out[:M, :H].reshape(orig_shape)


def ffn_reference(x, w1, b1, w2, b2, compute_dtype=jnp.bfloat16):
    # Mimics the kernel's mixed precision: bf16 operands, f32 accumulation.
    xc = x.astype(compute_dtype).astype(jnp.float32)
    w1c = w1.astype(compute_dtype).astype(jnp.float32)
    w2c = w2.astype(compute_dtype).astype(jnp.float32)
    h = jnp.maximum(xc @ w1c + b1.astype(jnp.float32), 0.0)
    h = h.astype(compute_dtype).astype(jnp.float32)
    return (h @ w2c + b2.astype(jnp.float32)).astype(x.dtype)


if __name__ == "__main__":
    key = jax.random.PRNGKey(0)
    batch, boxes, hidden = 2, 24, 128      # small shapes; hidden kept lane-aligned (x128)
    ff = 4 * hidden                        # FFN inner dim

    k_x, k_w1, k_b1, k_w2, k_b2 = jax.random.split(key, 5)
    x = jax.random.normal(k_x, (batch, boxes, hidden), dtype=jnp.float32)

    # nn.Linear-style uniform(-1/sqrt(fan_in), 1/sqrt(fan_in)) init.
    bound1 = 1.0 / (hidden ** 0.5)
    bound2 = 1.0 / (ff ** 0.5)
    w1 = jax.random.uniform(k_w1, (hidden, ff), jnp.float32, -bound1, bound1)
    b1 = jax.random.uniform(k_b1, (ff,), jnp.float32, -bound1, bound1)
    w2 = jax.random.uniform(k_w2, (ff, hidden), jnp.float32, -bound2, bound2)
    b2 = jax.random.uniform(k_b2, (hidden,), jnp.float32, -bound2, bound2)

    ref = ffn_reference(x, w1, b1, w2, b2)

    # Default config -> resident-weight fast path at these sizes.
    out_resident = ffn_pallas(x, w1, b1, w2, b2)
    jax.block_until_ready(out_resident)

    # Force the streaming path with small explicit tiles to exercise the
    # multi-step grid + F-axis accumulator code.
    out_streamed = ffn_pallas(x, w1, b1, w2, b2, tm=16, tf=128,
                              max_resident_weight_bytes=0)
    jax.block_until_ready(out_streamed)

    assert out_resident.shape == x.shape and out_streamed.shape == x.shape
    assert jnp.allclose(out_resident, ref, atol=2e-3, rtol=2e-3), "resident-path mismatch"
    assert jnp.allclose(out_streamed, ref, atol=2e-3, rtol=2e-3), "streaming-path mismatch"

    print("KERNEL_OK")
</pallas_src>

<mosaic_0001>
module attributes {stable_mosaic.version = 11 : i64} {
  func.func @ffn_resident_kernel(%arg0: i32, %arg1: memref<48x128xbf16, #tpu.memory_space<vmem>>, %arg2: memref<128x512xbf16, #tpu.memory_space<vmem>>, %arg3: memref<1x512xf32, #tpu.memory_space<vmem>>, %arg4: memref<512x128xbf16, #tpu.memory_space<vmem>>, %arg5: memref<1x128xf32, #tpu.memory_space<vmem>>, %arg6: memref<48x128xf32, #tpu.memory_space<vmem>>) attributes {dimension_semantics = [#tpu.dimension_semantics<parallel>], iteration_bounds = array<i64: 1>, scalar_prefetch = 0 : i64, scratch_operands = 0 : i64, tpu.core_type = #tpu.core_type<tc>, window_params = [{transform_indices = @transform_0, window_bounds = array<i64: 48, 128>}, {pipeline_mode = #tpu.pipeline_mode<synchronous>, transform_indices = @transform_1, window_bounds = array<i64: 128, 512>}, {pipeline_mode = #tpu.pipeline_mode<synchronous>, transform_indices = @transform_2, window_bounds = array<i64: 1, 512>}, {pipeline_mode = #tpu.pipeline_mode<synchronous>, transform_indices = @transform_3, window_bounds = array<i64: 512, 128>}, {pipeline_mode = #tpu.pipeline_mode<synchronous>, transform_indices = @transform_4, window_bounds = array<i64: 1, 128>}, {transform_indices = @transform_5, window_bounds = array<i64: 48, 128>}]} {
    %c0 = arith.constant 0 : index
    %c0_0 = arith.constant 0 : index
    %0 = vector.load %arg1[%c0, %c0_0] : memref<48x128xbf16, #tpu.memory_space<vmem>>, vector<48x128xbf16>
    %c0_1 = arith.constant 0 : index
    %c0_2 = arith.constant 0 : index
    %1 = vector.load %arg2[%c0_1, %c0_2] : memref<128x512xbf16, #tpu.memory_space<vmem>>, vector<128x512xbf16>
    %cst = arith.constant dense<0.000000e+00> : vector<48x512xf32>
    %2 = tpu.matmul %0, %1, %cst {dimension_numbers = #tpu.dot_dimension_numbers<[1], [0], [0], [1], [0, 0, 1, 1], [], []>} : vector<48x128xbf16>, vector<128x512xbf16>, vector<48x512xf32> -> vector<48x512xf32>
    %c0_3 = arith.constant 0 : index
    %c0_4 = arith.constant 0 : index
    %3 = vector.load %arg3[%c0_3, %c0_4] : memref<1x512xf32, #tpu.memory_space<vmem>>, vector<1x512xf32>
    %4 = vector.broadcast %3 : vector<1x512xf32> to vector<48x512xf32>
    %5 = arith.addf %2, %4 : vector<48x512xf32>
    %cst_5 = arith.constant 0.000000e+00 : f32
    %6 = vector.broadcast %cst_5 : f32 to vector<48x512xf32>
    %7 = arith.maximumf %5, %6 : vector<48x512xf32>
    %8 = arith.truncf %7 : vector<48x512xf32> to vector<48x512xbf16>
    %c0_6 = arith.constant 0 : index
    %c0_7 = arith.constant 0 : index
    %9 = vector.load %arg4[%c0_6, %c0_7] : memref<512x128xbf16, #tpu.memory_space<vmem>>, vector<512x128xbf16>
    %cst_8 = arith.constant dense<0.000000e+00> : vector<48x128xf32>
    %10 = tpu.matmul %8, %9, %cst_8 {dimension_numbers = #tpu.dot_dimension_numbers<[1], [0], [0], [1], [0, 0, 1, 1], [], []>} : vector<48x512xbf16>, vector<512x128xbf16>, vector<48x128xf32> -> vector<48x128xf32>
    %c0_9 = arith.constant 0 : index
    %c0_10 = arith.constant 0 : index
    %11 = vector.load %arg5[%c0_9, %c0_10] : memref<1x128xf32, #tpu.memory_space<vmem>>, vector<1x128xf32>
    %12 = vector.broadcast %11 : vector<1x128xf32> to vector<48x128xf32>
    %13 = arith.addf %10, %12 : vector<48x128xf32>
    %c0_11 = arith.constant 0 : index
    %c0_12 = arith.constant 0 : index
    %14 = vector.load %arg6[%c0_11, %c0_12] : memref<48x128xf32, #tpu.memory_space<vmem>>, vector<48x128xf32>
    tpu.vector_store %arg6[%c0_11, %c0_12], %13 {strides = array<i32>} : memref<48x128xf32, #tpu.memory_space<vmem>>, vector<48x128xf32>,
    return
  }
  func.func @transform_0(%arg0: i32) -> (i32, i32) {
    %c0_i32 = arith.constant 0 : i32
    %c0_i32_0 = arith.constant 0 : i32
    return %arg0, %c0_i32 : i32, i32
  }
  func.func @transform_1(%arg0: i32) -> (i32, i32) {
    %c0_i32 = arith.constant 0 : i32
    %c0_i32_0 = arith.constant 0 : i32
    %c0_i32_1 = arith.constant 0 : i32
    return %c0_i32, %c0_i32_0 : i32, i32
  }
  func.func @transform_2(%arg0: i32) -> (i32, i32) {
    %c0_i32 = arith.constant 0 : i32
    %c0_i32_0 = arith.constant 0 : i32
    %c0_i32_1 = arith.constant 0 : i32
    return %c0_i32, %c0_i32_0 : i32, i32
  }
  func.func @transform_3(%arg0: i32) -> (i32, i32) {
    %c0_i32 = arith.constant 0 : i32
    %c0_i32_0 = arith.constant 0 : i32
    %c0_i32_1 = arith.constant 0 : i32
    return %c0_i32, %c0_i32_0 : i32, i32
  }
  func.func @transform_4(%arg0: i32) -> (i32, i32) {
    %c0_i32 = arith.constant 0 : i32
    %c0_i32_0 = arith.constant 0 : i32
    %c0_i32_1 = arith.constant 0 : i32
    return %c0_i32, %c0_i32_0 : i32, i32
  }
  func.func @transform_5(%arg0: i32) -> (i32, i32) {
    %c0_i32 = arith.constant 0 : i32
    %c0_i32_0 = arith.constant 0 : i32
    return %arg0, %c0_i32 : i32, i32
  }
}

</mosaic_0001>

<bundles_post_ra>
// kernel: tpu_custom_call.1
= control target key start
LH: loop header
LB: loop body
LE: loop exit
PB: predicated region body
PF: predicated region fallthrough
CT: control target
= control target key end

     0   :  { %10 = vsyncpa [#allocation3], 0  ;;  %s1389_s0 = inlined_call_operand.hbm [shape: bf16[48,128], index: 0, kind: input, shape index: {}]   ;;  %s1390_s1 = inlined_call_operand.hbm [shape: bf16[128,512], index: 1, kind: input, shape index: {}]   ;;  %s1391_s2 = inlined_call_operand.hbm [shape: f32[1,512], index: 2, kind: input, shape index: {}]   ;;  %s1392_s3 = inlined_call_operand.hbm [shape: bf16[512,128], index: 3, kind: input, shape index: {}]   ;;  %s1393_s4 = inlined_call_operand.vmem [shape: f32[1,128], index: 4, kind: input, shape index: {}]   ;;  %s1394_s5 = inlined_call_operand.hbm [shape: f32[48,128], index: 5, kind: output, shape index: {}]  }
   0x1   :  { %11 = vsyncpa [#allocation6], 0 }
   0x2   :  { %12 = vsyncpa [#allocation9], 0  ;;  %s31_s20 = sshll.u32 %s1390_s1, 4  ;;  %s32_s20 = int_to_ptr.hbm [resolvable:$true] %s31_s20 }
   0x3   :  { %13 = vsyncpa [#allocation4], 0  ;;  %s1298_s21 = smov [#allocation5]   ;;  %s18_s25 = sshll.u32 %s1389_s0, 4  ;;  %s19_s25 = int_to_ptr.hbm [resolvable:$true] %s18_s25 }
   0x4   :  { %s33_s22 = sshll.u32 %s1298_s21, 4  ;;  %s1299_s26 = smov 256   ;;  %s34_s22 = int_to_ptr.vmem [resolvable:$true] %s33_s22 }
   0x5   :  { %s1300_s27 = smov 16   ;;  %s1301_s28 = smov [#allocation2]  }
   0x6   :  { %39 = dma.hbm_to_vmem [thread:$0]  %s32_s20, 4096, %s34_s22, [#allocation6], %s1299_s26, %s1299_s26, %s1300_s27  }
   0x7   :  { %s20_s29 = sshll.u32 %s1301_s28, 4  ;;  %s1302_s30 = smov 64   ;;  %s21_s29 = int_to_ptr.vmem [resolvable:$true] %s20_s29 }
   0x8   :  { %s1303_s6 = smov 4   ;;  %s45_s8 = sshll.u32 %s1391_s2, 4  ;;  %s46_s8 = int_to_ptr.hbm [resolvable:$true] %s45_s8 }
   0x9   :  { %26 = dma.hbm_to_vmem [thread:$0]  %s19_s25, 384, %s21_s29, [#allocation3], %s1302_s30, %s1302_s30, %s1303_s6  }
   0xa   :  { %s1304_s9 = smov [#allocation7]   ;;  %s55_s12 = sshll.u32 %s1392_s3, 4  ;;  %s56_s12 = int_to_ptr.hbm [resolvable:$true] %s55_s12 }
   0xb   :  { %s47_s10 = sshll.u32 %s1304_s9, 4  ;;  %s1305_s13 = smov [#allocation8]   ;;  %s48_s10 = int_to_ptr.vmem [resolvable:$true] %s47_s10 }
   0xc   :  { %50 = dma.hbm_to_vmem [thread:$0]  %s46_s8, 64, %s48_s10, [#allocation6]  }
   0xd   :  { %s57_s14 = sshll.u32 %s1305_s13, 4  ;;  %s58_s14 = int_to_ptr.vmem [resolvable:$true] %s57_s14 }
   0xe   :  { %63 = dma.hbm_to_vmem [thread:$0]  %s56_s12, 4096, %s58_s14, [#allocation9], %s1302_s30, %s1302_s30, %s1303_s6  }
   0xf   :  { %1290 = dma.done.wait [#allocation3], 384  }
  0x10   :  { %1291 = vsyncadd [#allocation3], 4294966912 }
  0x11   :  { %1292 = dma.done.wait [#allocation6], 4160  }
  0x12   :  { %1293 = vsyncadd [#allocation6], 4294963136 }
  0x13   :  { %1294 = dma.done.wait [#allocation9], 4096  }
  0x14   :  { %1295 = vsyncadd [#allocation9], 4294963200  ;;  %v949_v0 = vld [vmem:[#allocation5 + $0xe0] sm:$0xf]  ;;  %v1124_v1 = vld [vmem:[#allocation5 + $0xec] sm:$0xf0] }
  0x15   :  { %v1122_v2 = vld [vmem:[#allocation5 + $0xe4] sm:$0xf]  ;;  %v950_v3 = vor.u32 %v1124_v1, %v949_v0  ;;  %v951_v4 = vld [vmem:[#allocation5 + $0xf0] sm:$0xf0]  ;;  %v957_v5 = vld [vmem:[#allocation5 + $0xe8] sm:$0xf] }
  0x16   :  { %v1125_v6 = vld [vmem:[#allocation5 + $0xf4] sm:$0xf0]  ;;  %v954_v7 = vor.u32 %v1122_v2, %v951_v4  ;;  %v1123_v9 = vld [vmem:[#allocation5 + $0xec] sm:$0xf]  ;;  %v959_v10 = vld [vmem:[#allocation5 + $0xf8] sm:$0xf0] }
  0x17   :  { %v958_v8 = vor.u32 %v1125_v6, %v957_v5  ;;  %v933_v11 = vld [vmem:[#allocation5 + $0xc0] sm:$0xf]  ;;  %308 = vmatpush.bf16.msra.mxu0 %v950_v3  ;;  %v962_v12 = vor.u32 %v1123_v9, %v959_v10  ;;  %v1120_v13 = vld [vmem:[#allocation5 + $0xcc] sm:$0xf0]  ;;  %v1118_v14 = vld [vmem:[#allocation5 + $0xc4] sm:$0xf] }
  0x18   :  { %v935_v15 = vld [vmem:[#allocation5 + $0xd0] sm:$0xf0]  ;;  %332 = vmatpush.bf16.msra.mxu1 %v954_v7  ;;  %v934_v16 = vor.u32 %v1120_v13, %v933_v11  ;;  %v941_v18 = vld [vmem:[#allocation5 + $0xc8] sm:$0xf]  ;;  %v1121_v19 = vld [vmem:[#allocation5 + $0xd4] sm:$0xf0] }
  0x19   :  { %356 = vmatpush.bf16.msra.mxu2 %v958_v8  ;;  %v938_v17 = vor.u32 %v1118_v14, %v935_v15  ;;  %v1119_v20 = vld [vmem:[#allocation5 + $0xcc] sm:$0xf]  ;;  %380 = vmatpush.bf16.msra.mxu3 %v962_v12  ;;  %v942_v21 = vor.u32 %v1121_v19, %v941_v18  ;;  %v943_v22 = vld [vmem:[#allocation5 + $0xd8] sm:$0xf0]  ;;  %v917_v23 = vld [vmem:[#allocation5 + $0xa0] sm:$0xf] }
  0x1a   :  { %v1116_v24 = vld [vmem:[#allocation5 + $0xac] sm:$0xf0]  ;;  %v946_v25 = vor.u32 %v1119_v20, %v943_v22  ;;  %v1114_v26 = vld [vmem:[#allocation5 + $0xa4] sm:$0xf]  ;;  %v919_v27 = vld [vmem:[#allocation5 + $0xb0] sm:$0xf0] }
  0x1b   :  { %v925_v28 = vld [vmem:[#allocation5 + $0xa8] sm:$0xf]  ;;  %309 = vmatpush.bf16.msra.mxu0 %v934_v16  ;;  %v918_v29 = vor.u32 %v1116_v24, %v917_v23  ;;  %v1117_v30 = vld [vmem:[#allocation5 + $0xb4] sm:$0xf0]  ;;  %v1115_v31 = vld [vmem:[#allocation5 + $0xac] sm:$0xf]  ;;  %v922_v33 = vor.u32 %v1114_v26, %v919_v27 }
  0x1c   :  { %v927_v32 = vld [vmem:[#allocation5 + $0xb8] sm:$0xf0]  ;;  %333 = vmatpush.bf16.msra.mxu1 %v938_v17  ;;  %v926_v34 = vor.u32 %v1117_v30, %v925_v28  ;;  %v901_v35 = vld [vmem:[#allocation5 + $0x80] sm:$0xf]  ;;  %v1112_v36 = vld [vmem:[#allocation5 + $0x8c] sm:$0xf0] }
  0x1d   :  { %357 = vmatpush.bf16.msra.mxu2 %v942_v21  ;;  %v1110_v37 = vld [vmem:[#allocation5 + $0x84] sm:$0xf]  ;;  %381 = vmatpush.bf16.msra.mxu3 %v946_v25  ;;  %v930_v38 = vor.u32 %v1115_v31, %v927_v32  ;;  %v903_v39 = vld [vmem:[#allocation5 + $0x90] sm:$0xf0]  ;;  %v909_v40 = vld [vmem:[#allocation5 + $0x88] sm:$0xf]  ;;  %v902_v44 = vor.u32 %v1112_v36, %v901_v35 }
  0x1e   :  { %v1113_v41 = vld [vmem:[#allocation5 + $0x94] sm:$0xf0]  ;;  %v1111_v42 = vld [vmem:[#allocation5 + $0x8c] sm:$0xf]  ;;  %v911_v43 = vld [vmem:[#allocation5 + $0x98] sm:$0xf0]  ;;  %v906_v45 = vor.u32 %v1110_v37, %v903_v39 }
  0x1f   :  { %310 = vmatpush.bf16.msra.mxu0 %v918_v29  ;;  %v910_v46 = vor.u32 %v1113_v41, %v909_v40  ;;  %v885_v47 = vld [vmem:[#allocation5 + $0x60] sm:$0xf]  ;;  %v1108_v48 = vld [vmem:[#allocation5 + $0x6c] sm:$0xf0]  ;;  %v1106_v49 = vld [vmem:[#allocation5 + $0x64] sm:$0xf]  ;;  %v914_v50 = vor.u32 %v1111_v42, %v911_v43 }
  0x20   :  { %334 = vmatpush.bf16.msra.mxu1 %v922_v33  ;;  %v887_v51 = vld [vmem:[#allocation5 + $0x70] sm:$0xf0]  ;;  %v893_v52 = vld [vmem:[#allocation5 + $0x68] sm:$0xf]  ;;  %v1109_v53 = vld [vmem:[#allocation5 + $0x74] sm:$0xf0]  ;;  %v886_v56 = vor.u32 %v1108_v48, %v885_v47 }
  0x21   :  { %358 = vmatpush.bf16.msra.mxu2 %v926_v34  ;;  %382 = vmatpush.bf16.msra.mxu3 %v930_v38  ;;  %v1107_v54 = vld [vmem:[#allocation5 + $0x6c] sm:$0xf]  ;;  %v895_v55 = vld [vmem:[#allocation5 + $0x78] sm:$0xf0]  ;;  %v890_v57 = vor.u32 %v1106_v49, %v887_v51  ;;  %v894_v58 = vor.u32 %v1109_v53, %v893_v52  ;;  %v869_v59 = vld [vmem:[#allocation5 + $0x40] sm:$0xf] }
  0x22   :  { %v1104_v60 = vld [vmem:[#allocation5 + $0x4c] sm:$0xf0]  ;;  %v1102_v61 = vld [vmem:[#allocation5 + $0x44] sm:$0xf]  ;;  %v898_v62 = vor.u32 %v1107_v54, %v895_v55  ;;  %v871_v63 = vld [vmem:[#allocation5 + $0x50] sm:$0xf0] }
  0x23   :  { %311 = vmatpush.bf16.msra.mxu0 %v902_v44  ;;  %v877_v0 = vld [vmem:[#allocation5 + $0x48] sm:$0xf]  ;;  %v1105_v1 = vld [vmem:[#allocation5 + $0x54] sm:$0xf0]  ;;  %v1103_v2 = vld [vmem:[#allocation5 + $0x4c] sm:$0xf]  ;;  %v870_v4 = vor.u32 %v1104_v60, %v869_v59  ;;  %v874_v5 = vor.u32 %v1102_v61, %v871_v63 }
  0x24   :  { %335 = vmatpush.bf16.msra.mxu1 %v906_v45  ;;  %v879_v3 = vld [vmem:[#allocation5 + $0x58] sm:$0xf0]  ;;  %v878_v6 = vor.u32 %v1105_v1, %v877_v0  ;;  %v853_v7 = vld [vmem:[#allocation5 + $0x20] sm:$0xf]  ;;  %v1100_v8 = vld [vmem:[#allocation5 + $0x2c] sm:$0xf0] }
  0x25   :  { %359 = vmatpush.bf16.msra.mxu2 %v910_v46  ;;  %383 = vmatpush.bf16.msra.mxu3 %v914_v50  ;;  %v1098_v9 = vld [vmem:[#allocation5 + $0x24] sm:$0xf]  ;;  %v882_v10 = vor.u32 %v1103_v2, %v879_v3  ;;  %v855_v11 = vld [vmem:[#allocation5 + $0x30] sm:$0xf0]  ;;  %v861_v12 = vld [vmem:[#allocation5 + $0x28] sm:$0xf]  ;;  %v854_v16 = vor.u32 %v1100_v8, %v853_v7 }
  0x26   :  { %v1101_v13 = vld [vmem:[#allocation5 + $0x34] sm:$0xf0]  ;;  %v1099_v14 = vld [vmem:[#allocation5 + $0x2c] sm:$0xf]  ;;  %v863_v15 = vld [vmem:[#allocation5 + $0x38] sm:$0xf0]  ;;  %v858_v17 = vor.u32 %v1098_v9, %v855_v11 }
  0x27   :  { %312 = vmatpush.bf16.msra.mxu0 %v886_v56  ;;  %v862_v18 = vor.u32 %v1101_v13, %v861_v12  ;;  %v837_v19 = vld [vmem:[#allocation5] sm:$0xf]  ;;  %v1096_v20 = vld [vmem:[#allocation5 + $0xc] sm:$0xf0]  ;;  %v1094_v21 = vld [vmem:[#allocation5 + $0x4] sm:$0xf]  ;;  %v866_v22 = vor.u32 %v1099_v14, %v863_v15 }
  0x28   :  { %336 = vmatpush.bf16.msra.mxu1 %v890_v57  ;;  %v839_v23 = vld [vmem:[#allocation5 + $0x10] sm:$0xf0]  ;;  %v845_v24 = vld [vmem:[#allocation5 + $0x8] sm:$0xf]  ;;  %v1097_v25 = vld [vmem:[#allocation5 + $0x14] sm:$0xf0]  ;;  %v838_v28 = vor.u32 %v1096_v20, %v837_v19 }
  0x29   :  { %360 = vmatpush.bf16.msra.mxu2 %v894_v58  ;;  %384 = vmatpush.bf16.msra.mxu3 %v898_v62  ;;  %v1095_v26 = vld [vmem:[#allocation5 + $0xc] sm:$0xf]  ;;  %v847_v27 = vld [vmem:[#allocation5 + $0x18] sm:$0xf0]  ;;  %v842_v29 = vor.u32 %v1094_v21, %v839_v23  ;;  %v846_v30 = vor.u32 %v1097_v25, %v845_v24  ;;  %v1148_v37 = vld [vmem:[#allocation8 + $0xb0] sm:$0xff]  ;;  %s808_s18 = sshll.u32 %s1394_s5, 4  ;;  %s809_s18 = int_to_ptr.hbm [resolvable:$true] %s808_s18 }
  0x2a   :  { %v850_v31 = vor.u32 %v1095_v26, %v847_v27  ;;  %v1091_v32 = vld [vmem:[#allocation2] sm:$0xff]  ;;  %v1149_v33 = vld [vmem:[#allocation8 + $0xb8] sm:$0xff]  ;;  %v1132_v38 = vld [vmem:[#allocation8 + $0x30] sm:$0xff]  ;;  %s1307_s19 = smov 128   ;;  %s1308_s20 = smov 8  }
  0x2b   :  { %313 = vmatpush.bf16.msra.mxu0 %v870_v4  ;;  %v1133_v34 = vld [vmem:[#allocation8 + $0x38] sm:$0xff]  ;;  %v1156_v39 = vld [vmem:[#allocation8 + $0xf0] sm:$0xff]  ;;  %v1147_v41 = vld [vmem:[#allocation8 + $0xa8] sm:$0xff] }
  0x2c   :  { %337 = vmatpush.bf16.msra.mxu1 %v874_v5  ;;  %v1157_v35 = vld [vmem:[#allocation8 + $0xf8] sm:$0xff]  ;;  %v1140_v40 = vld [vmem:[#allocation8 + $0x70] sm:$0xff]  ;;  %v1131_v42 = vld [vmem:[#allocation8 + $0x28] sm:$0xff] }
  0x2d   :  { %361 = vmatpush.bf16.msra.mxu2 %v878_v6  ;;  %385 = vmatpush.bf16.msra.mxu3 %v882_v10  ;;  %v1141_v36 = vld [vmem:[#allocation8 + $0x78] sm:$0xff]  ;;  %v1155_v43 = vld [vmem:[#allocation8 + $0xe8] sm:$0xff]  ;;  %v1146_v46 = vld [vmem:[#allocation8 + $0xa0] sm:$0xff] }
  0x2e   :  { %v1139_v44 = vld [vmem:[#allocation8 + $0x68] sm:$0xff]  ;;  %v1130_v47 = vld [vmem:[#allocation8 + $0x20] sm:$0xff]  ;;  %v1145_v50 = vld [vmem:[#allocation8 + $0x98] sm:$0xff] }
  0x2f   :  { %314 = vmatpush.bf16.msra.mxu0 %v854_v16  ;;  %v1092_v45 = vld [vmem:[#allocation2 + $0x8] sm:$0xff]  ;;  %v1154_v48 = vld [vmem:[#allocation8 + $0xe0] sm:$0xff]  ;;  %v1129_v51 = vld [vmem:[#allocation8 + $0x18] sm:$0xff] }
  0x30   :  { %338 = vmatpush.bf16.msra.mxu1 %v858_v17  ;;  %v1138_v49 = vld [vmem:[#allocation8 + $0x60] sm:$0xff]  ;;  %v1153_v52 = vld [vmem:[#allocation8 + $0xd8] sm:$0xff]  ;;  %v1144_v55 = vld [vmem:[#allocation8 + $0x90] sm:$0xff] }
  0x31   :  { %362 = vmatpush.bf16.msra.mxu2 %v862_v18  ;;  %386 = vmatpush.bf16.msra.mxu3 %v866_v22  ;;  %v1093_v53 = vld [vmem:[#allocation2 + $0x10] sm:$0xff]  ;;  %v1127_v59 = vld [vmem:[#allocation8 + $0x8] sm:$0xff]  ;;  %v1126_v61 = vld [vmem:[#allocation8] sm:$0xff] }
  0x32   :  { %v1137_v54 = vld [vmem:[#allocation8 + $0x58] sm:$0xff]  ;;  %v1128_v56 = vld [vmem:[#allocation8 + $0x10] sm:$0xff]  ;;  %v1135_v60 = vld [vmem:[#allocation8 + $0x48] sm:$0xff] }
  0x33   :  { %315 = vmatpush.bf16.msra.mxu0 %v838_v28  ;;  %v1136_v57 = vld [vmem:[#allocation8 + $0x50] sm:$0xff]  ;;  %v1134_v62 = vld [vmem:[#allocation8 + $0x40] sm:$0xff]  ;;  %v1143_v63 = vld [vmem:[#allocation8 + $0x88] sm:$0xff] }
  0x34   :  { %339 = vmatpush.bf16.msra.mxu1 %v842_v29  ;;  %v1152_v58 = vld [vmem:[#allocation8 + $0xd0] sm:$0xff]  ;;  %v1151_v0 = vld [vmem:[#allocation8 + $0xc8] sm:$0xff]  ;;  %v1142_v1 = vld [vmem:[#allocation8 + $0x80] sm:$0xff] }
  0x35   :  { %363 = vmatpush.bf16.msra.mxu2 %v846_v30  ;;  %387 = vmatpush.bf16.msra.mxu3 %v850_v31  ;;  %v1150_v2 = vld [vmem:[#allocation8 + $0xc0] sm:$0xff]  ;;  %v120_v3 = vld [vmem:[#allocation7] sm:$0xf] }
  0x36   :  { %316 = vmatmul.bf16.vlgmr.msra.gmra.mxu0 %v1091_v32  ;;  %v1351_v5 = vperm.slane %v120_v3, 0  ;;  %v1353_v7 = vperm.slane %v120_v3, 1  ;;  %v1358_v17 = vperm.slane %v120_v3, 2  ;;  %v1361_v19 = vperm.slane %v120_v3, 3 }
  0x37   :  { %340 = vmatmul.bf16.vlgmr.msra.gmra.mxu1 %v1091_v32  ;;  %700 = vmatpush.bf16.msrb.mxu0 %v1133_v34 }
  0x38   :  { %364 = vmatmul.bf16.vlgmr.msra.gmra.mxu2 %v1091_v32  ;;  %388 = vmatmul.bf16.vlgmr.msra.gmra.mxu3 %v1091_v32 }
  0x39   :  { %748 = vmatpush.bf16.msrb.mxu2 %v1149_v33  ;;  %772 = vmatpush.bf16.msrb.mxu3 %v1157_v35 }
  0x3a   :  { %724 = vmatpush.bf16.msrb.mxu1 %v1141_v36 }
  0x3b   :  { %701 = vmatpush.bf16.msrb.mxu0 %v1132_v38 }
  0x3d   :  { %749 = vmatpush.bf16.msrb.mxu2 %v1148_v37  ;;  %773 = vmatpush.bf16.msrb.mxu3 %v1156_v39 }
  0x3e   :  { %725 = vmatpush.bf16.msrb.mxu1 %v1140_v40 }
  0x3f   :  { %702 = vmatpush.bf16.msrb.mxu0 %v1131_v42 }
  0x41   :  { %750 = vmatpush.bf16.msrb.mxu2 %v1147_v41  ;;  %774 = vmatpush.bf16.msrb.mxu3 %v1155_v43 }
  0x42   :  { %726 = vmatpush.bf16.msrb.mxu1 %v1139_v44 }
  0x43   :  { %703 = vmatpush.bf16.msrb.mxu0 %v1130_v47 }
  0x45   :  { %751 = vmatpush.bf16.msrb.mxu2 %v1146_v46  ;;  %775 = vmatpush.bf16.msrb.mxu3 %v1154_v48 }
  0x46   :  { %321 = vmatmul.bf16.gmra.mxu0 %v1092_v45  ;;  %727 = vmatpush.bf16.msrb.mxu1 %v1138_v49 }
  0x47   :  { %345 = vmatmul.bf16.gmra.mxu1 %v1092_v45  ;;  %704 = vmatpush.bf16.msrb.mxu0 %v1129_v51 }
  0x48   :  { %369 = vmatmul.bf16.gmra.mxu2 %v1092_v45  ;;  %393 = vmatmul.bf16.gmra.mxu3 %v1092_v45 }
  0x49   :  { %752 = vmatpush.bf16.msrb.mxu2 %v1145_v50  ;;  %776 = vmatpush.bf16.msrb.mxu3 %v1153_v52 }
  0x4a   :  { %728 = vmatpush.bf16.msrb.mxu1 %v1137_v54 }
  0x4b   :  { %705 = vmatpush.bf16.msrb.mxu0 %v1128_v56 }
  0x4d   :  { %753 = vmatpush.bf16.msrb.mxu2 %v1144_v55  ;;  %777 = vmatpush.bf16.msrb.mxu3 %v1152_v58 }
  0x4e   :  { %729 = vmatpush.bf16.msrb.mxu1 %v1136_v57 }
  0x4f   :  { %706 = vmatpush.bf16.msrb.mxu0 %v1127_v59 }
  0x51   :  { %754 = vmatpush.bf16.msrb.mxu2 %v1143_v63  ;;  %778 = vmatpush.bf16.msrb.mxu3 %v1151_v0 }
  0x52   :  { %730 = vmatpush.bf16.msrb.mxu1 %v1135_v60 }
  0x53   :  { %707 = vmatpush.bf16.msrb.mxu0 %v1126_v61 }
  0x55   :  { %755 = vmatpush.bf16.msrb.mxu2 %v1142_v1  ;;  %779 = vmatpush.bf16.msrb.mxu3 %v1150_v2 }
  0x56   :  { %326 = vmatmul.bf16.gmra.mxu0 %v1093_v53  ;;  %731 = vmatpush.bf16.msrb.mxu1 %v1134_v62 }
  0x57   :  { %350 = vmatmul.bf16.gmra.mxu1 %v1093_v53 }
  0x58   :  { %374 = vmatmul.bf16.gmra.mxu2 %v1093_v53  ;;  %398 = vmatmul.bf16.gmra.mxu3 %v1093_v53 }
  0xb3   :  { %v317_v4 = vpop.f32.mrf.mxu0 }
  0xb4   :  { %v341_v6 = vpop.f32.mrf.mxu1  ;;  %v318_v8 = vadd.f32 %v317_v4, %v1351_v5 }
  0xb5   :  { %v342_v9 = vadd.f32 %v341_v6, %v1353_v7 }
  0xb6   :  { %v404_v13 = vmax.f32 %v318_v8, 0.0 }
  0xb7   :  { %v405_v16 = vmax.f32 %v342_v9, 0.0 }
  0xbb   :  { %v365_v10 = vpop.f32.mrf.mxu2  ;;  %v389_v11 = vpop.f32.mrf.mxu3 }
  0xbc   :  { %v319_v12 = vpop.f32.mrf.mxu0  ;;  %v343_v15 = vpop.f32.mrf.mxu1  ;;  %v366_v23 = vadd.f32 %v365_v10, %v1358_v17  ;;  %v390_v25 = vadd.f32 %v389_v11, %v1361_v19 }
  0xbd   :  { %v320_v14 = vadd.f32 %v319_v12, %v1351_v5  ;;  %v344_v18 = vadd.f32 %v343_v15, %v1353_v7 }
  0xbe   :  { %v406_v32 = vmax.f32 %v366_v23, 0.0  ;;  %v407_v34 = vmax.f32 %v390_v25, 0.0 }
  0xbf   :  { %v408_v20 = vmax.f32 %v320_v14, 0.0  ;;  %v409_v21 = vmax.f32 %v344_v18, 0.0 }
  0xc1   :  { %v428_v22 = vpack.c.bf16 %v408_v20, %v404_v13  ;;  %v429_v24 = vpack.c.bf16 %v409_v21, %v405_v16 }
  0xc3   :  { %v367_v26 = vpop.f32.mrf.mxu2  ;;  %708 = vmatmul.bf16.vlgmr.msrb.gmra.mxu0 %v428_v22  ;;  %v391_v28 = vpop.f32.mrf.mxu3  ;;  %732 = vmatmul.bf16.vlgmr.msrb.gmra.mxu1 %v429_v24 }
  0xc4   :  { %v368_v27 = vadd.f32 %v367_v26, %v1358_v17  ;;  %v322_v29 = vpop.f32.mrf.mxu0  ;;  %v392_v30 = vadd.f32 %v391_v28, %v1361_v19  ;;  %v346_v31 = vpop.f32.mrf.mxu1 }
  0xc5   :  { %v323_v38 = vadd.f32 %v322_v29, %v1351_v5  ;;  %v347_v39 = vadd.f32 %v346_v31, %v1353_v7 }
  0xc6   :  { %v410_v33 = vmax.f32 %v368_v27, 0.0  ;;  %v411_v35 = vmax.f32 %v392_v30, 0.0 }
  0xc7   :  { %v412_v43 = vmax.f32 %v323_v38, 0.0  ;;  %v413_v46 = vmax.f32 %v347_v39, 0.0 }
  0xc8   :  { %v430_v36 = vpack.c.bf16 %v410_v33, %v406_v32  ;;  %v431_v37 = vpack.c.bf16 %v411_v35, %v407_v34  ;;  %v1169_v32 = vld [vmem:[%s1393_s4] ss:$0 sm:$0xff]  ;;  %s1306_s4 = smov [#allocation10]  }
  0xc9   :  { %s806_s15 = sshll.u32 %s1306_s4, 4  ;;  %s807_s15 = int_to_ptr.vmem [resolvable:$true] %s806_s15 }
  0xca   :  { %756 = vmatmul.bf16.vlgmr.msrb.gmra.mxu2 %v430_v36  ;;  %780 = vmatmul.bf16.vlgmr.msrb.gmra.mxu3 %v431_v37 }
  0xcb   :  { %v370_v40 = vpop.f32.mrf.mxu2  ;;  %v394_v41 = vpop.f32.mrf.mxu3 }
  0xcc   :  { %v324_v42 = vpop.f32.mrf.mxu0  ;;  %v348_v45 = vpop.f32.mrf.mxu1  ;;  %v371_v51 = vadd.f32 %v370_v40, %v1358_v17  ;;  %v395_v53 = vadd.f32 %v394_v41, %v1361_v19 }
  0xcd   :  { %v325_v44 = vadd.f32 %v324_v42, %v1351_v5  ;;  %v349_v47 = vadd.f32 %v348_v45, %v1353_v7 }
  0xce   :  { %v414_v60 = vmax.f32 %v371_v51, 0.0  ;;  %v415_v62 = vmax.f32 %v395_v53, 0.0 }
  0xcf   :  { %v416_v48 = vmax.f32 %v325_v44, 0.0  ;;  %v417_v49 = vmax.f32 %v349_v47, 0.0 }
  0xd1   :  { %v432_v50 = vpack.c.bf16 %v416_v48, %v412_v43  ;;  %v433_v52 = vpack.c.bf16 %v417_v49, %v413_v46 }
  0xd3   :  { %v372_v54 = vpop.f32.mrf.mxu2  ;;  %713 = vmatmul.bf16.gmra.mxu0 %v432_v50  ;;  %v396_v56 = vpop.f32.mrf.mxu3  ;;  %737 = vmatmul.bf16.gmra.mxu1 %v433_v52 }
  0xd4   :  { %v373_v55 = vadd.f32 %v372_v54, %v1358_v17  ;;  %v327_v57 = vpop.f32.mrf.mxu0  ;;  %v397_v58 = vadd.f32 %v396_v56, %v1361_v19  ;;  %v351_v59 = vpop.f32.mrf.mxu1 }
  0xd5   :  { %v328_v1 = vadd.f32 %v327_v57, %v1351_v5  ;;  %v352_v3 = vadd.f32 %v351_v59, %v1353_v7 }
  0xd6   :  { %v418_v61 = vmax.f32 %v373_v55, 0.0  ;;  %v419_v63 = vmax.f32 %v397_v58, 0.0 }
  0xd7   :  { %v420_v9 = vmax.f32 %v328_v1, 0.0  ;;  %v421_v12 = vmax.f32 %v352_v3, 0.0 }
  0xd8   :  { %v434_v0 = vpack.c.bf16 %v418_v61, %v414_v60  ;;  %v435_v2 = vpack.c.bf16 %v419_v63, %v415_v62 }
  0xda   :  { %761 = vmatmul.bf16.gmra.mxu2 %v434_v0  ;;  %785 = vmatmul.bf16.gmra.mxu3 %v435_v2 }
  0xdb   :  { %v375_v4 = vpop.f32.mrf.mxu2  ;;  %v399_v6 = vpop.f32.mrf.mxu3 }
  0xdc   :  { %v329_v8 = vpop.f32.mrf.mxu0  ;;  %v353_v11 = vpop.f32.mrf.mxu1  ;;  %v376_v18 = vadd.f32 %v375_v4, %v1358_v17  ;;  %v400_v21 = vadd.f32 %v399_v6, %v1361_v19 }
  0xdd   :  { %v330_v10 = vadd.f32 %v329_v8, %v1351_v5  ;;  %v354_v13 = vadd.f32 %v353_v11, %v1353_v7 }
  0xde   :  { %v422_v25 = vmax.f32 %v376_v18, 0.0  ;;  %v423_v27 = vmax.f32 %v400_v21, 0.0 }
  0xdf   :  { %v424_v14 = vmax.f32 %v330_v10, 0.0  ;;  %v425_v15 = vmax.f32 %v354_v13, 0.0 }
  0xe1   :  { %v436_v16 = vpack.c.bf16 %v424_v14, %v420_v9  ;;  %v437_v20 = vpack.c.bf16 %v425_v15, %v421_v12 }
  0xe3   :  { %v377_v22 = vpop.f32.mrf.mxu2  ;;  %718 = vmatmul.bf16.gmra.mxu0 %v436_v16  ;;  %v401_v24 = vpop.f32.mrf.mxu3  ;;  %742 = vmatmul.bf16.gmra.mxu1 %v437_v20 }
  0xe4   :  { %v378_v23 = vadd.f32 %v377_v22, %v1358_v17  ;;  %v402_v5 = vadd.f32 %v401_v24, %v1361_v19 }
  0xe6   :  { %v426_v26 = vmax.f32 %v378_v23, 0.0  ;;  %v427_v7 = vmax.f32 %v402_v5, 0.0 }
  0xe8   :  { %v438_v28 = vpack.c.bf16 %v426_v26, %v422_v25  ;;  %v439_v29 = vpack.c.bf16 %v427_v7, %v423_v27 }
  0xea   :  { %766 = vmatmul.bf16.gmra.mxu2 %v438_v28  ;;  %790 = vmatmul.bf16.gmra.mxu3 %v439_v29 }
 0x140   :  { %v709_v30 = vpop.f32.mrf.mxu0  ;;  %v733_v31 = vpop.f32.mrf.mxu1 }
 0x141   :  { %v710_v33 = vadd.f32 %v1169_v32, %v709_v30 }
 0x143   :  { %v734_v35 = vadd.f32 %v733_v31, %v710_v33 }
 0x148   :  { %v711_v17 = vpop.f32.mrf.mxu0  ;;  %v735_v34 = vpop.f32.mrf.mxu1 }
 0x149   :  { %v712_v38 = vadd.f32 %v1169_v32, %v711_v17 }
 0x14b   :  { %v736_v41 = vadd.f32 %v735_v34, %v712_v38 }
 0x14d   :  { %v757_v36 = vpop.f32.mrf.mxu2  ;;  %v781_v37 = vpop.f32.mrf.mxu3 }
 0x14e   :  { %v758_v19 = vadd.f32 %v757_v36, %v734_v35 }
 0x150   :  { %v782_v39 = vadd.f32 %v781_v37, %v758_v19  ;;  %v714_v40 = vpop.f32.mrf.mxu0  ;;  %v738_v42 = vpop.f32.mrf.mxu1 }
 0x151   :  { %v715_v46 = vadd.f32 %v1169_v32, %v714_v40 }
 0x152   :  { %796 = vst [vmem:[#allocation10] sm:$0xff] %v782_v39 }
 0x153   :  { %v739_v49 = vadd.f32 %v738_v42, %v715_v46 }
 0x155   :  { %v759_v43 = vpop.f32.mrf.mxu2  ;;  %v783_v45 = vpop.f32.mrf.mxu3 }
 0x156   :  { %v760_v44 = vadd.f32 %v759_v43, %v736_v41 }
 0x158   :  { %v784_v47 = vadd.f32 %v783_v45, %v760_v44  ;;  %v716_v48 = vpop.f32.mrf.mxu0  ;;  %v740_v53 = vpop.f32.mrf.mxu1 }
 0x159   :  { %v717_v54 = vadd.f32 %v1169_v32, %v716_v48 }
 0x15a   :  { %797 = vst [vmem:[#allocation10 + $0x8] sm:$0xff] %v784_v47 }
 0x15b   :  { %v741_v57 = vadd.f32 %v740_v53, %v717_v54 }
 0x15d   :  { %v762_v50 = vpop.f32.mrf.mxu2  ;;  %v786_v52 = vpop.f32.mrf.mxu3 }
 0x15e   :  { %v763_v51 = vadd.f32 %v762_v50, %v739_v49 }
 0x160   :  { %v787_v55 = vadd.f32 %v786_v52, %v763_v51  ;;  %v719_v56 = vpop.f32.mrf.mxu0  ;;  %v743_v63 = vpop.f32.mrf.mxu1 }
 0x161   :  { %v720_v61 = vadd.f32 %v1169_v32, %v719_v56 }
 0x162   :  { %798 = vst [vmem:[#allocation10 + $0x10] sm:$0xff] %v787_v55 }
 0x163   :  { %v744_v0 = vadd.f32 %v743_v63, %v720_v61 }
 0x165   :  { %v764_v58 = vpop.f32.mrf.mxu2  ;;  %v788_v60 = vpop.f32.mrf.mxu3 }
 0x166   :  { %v765_v59 = vadd.f32 %v764_v58, %v741_v57 }
 0x168   :  { %v789_v62 = vadd.f32 %v788_v60, %v765_v59  ;;  %v721_v1 = vpop.f32.mrf.mxu0  ;;  %v745_v9 = vpop.f32.mrf.mxu1 }
 0x169   :  { %v722_v6 = vadd.f32 %v1169_v32, %v721_v1 }
 0x16a   :  { %799 = vst [vmem:[#allocation10 + $0x18] sm:$0xff] %v789_v62 }
 0x16b   :  { %v746_v10 = vadd.f32 %v745_v9, %v722_v6 }
 0x16d   :  { %v767_v2 = vpop.f32.mrf.mxu2  ;;  %v791_v4 = vpop.f32.mrf.mxu3 }
 0x16e   :  { %v768_v3 = vadd.f32 %v767_v2, %v744_v0 }
 0x170   :  { %v792_v8 = vadd.f32 %v791_v4, %v768_v3 }
 0x172   :  { %800 = vst [vmem:[#allocation10 + $0x20] sm:$0xff] %v792_v8 }
 0x175   :  { %v769_v11 = vpop.f32.mrf.mxu2  ;;  %v793_v13 = vpop.f32.mrf.mxu3 }
 0x176   :  { %v770_v12 = vadd.f32 %v769_v11, %v746_v10 }
 0x178   :  { %v794_v14 = vadd.f32 %v793_v13, %v770_v12 }
 0x17a   :  { %801 = vst [vmem:[#allocation10 + $0x28] sm:$0xff] %v794_v14 }
 0x17b   :  { %814 = dma.vmem_to_hbm [thread:$0]  %s807_s15, 768, %s809_s18, [#allocation4], %s1307_s19, %s1307_s19, %s1308_s20  }
 0x17c   :  { %1296 = dma.done.wait [#allocation4], 768  }
 0x17d   :  { %1297 = vsyncadd [#allocation4], 4294966528 }
 0x17e   :  { %819 = vsyncpa [#allocation3], 1 }
 0x17f   :  { %820 = vsyncpa [#allocation6], 1 }
 0x180   :  { %821 = vsyncpa [#allocation9], 1 }
 0x181   :  { %822 = vsyncpa [#allocation4], 1 }

</bundles_post_ra>
